<compile_context>
chip_gen: v6e
topology: v6e:2x2x1
jax: 0.10.0
libtpu: 0.0.40
codegen_flags: <defaults>
</compile_context>

<pallas_src>
import jax
import jax.numpy as jnp
from jax.experimental import pallas as pl
from jax.experimental.pallas import tpu as pltpu


def _round_up(v, m):
    return -(-v // m) * m


def _vmem_capacity_bytes():
    try:
        info = pltpu.get_tpu_info()
        cap = getattr(info, "vmem_capacity_bytes", None)
        if cap:
            return int(cap)
    except Exception:
        pass
    return 64 * 1024 * 1024  # conservative fallback (v7x per-TensorCore)


def _vmem_footprint(tm, tn, d_pad, feat_bytes):
    feat = 2 * (tm + tn) * d_pad * feat_bytes   # double-buffered feature tiles
    small = 2 * 2 * (tm + tn) * 4               # sq-norms + labels, double-buffered
    interm = 4 * tm * tn * 4                    # gram / dist2 / where temporaries (f32)
    scratch = 4 * tm * 4                        # accumulators + output block
    return feat + small + interm + scratch


def _triplet_kernel(margin):
    def kernel(xr_ref, xct_ref, sqr_ref, sqc_ref, lr_ref, lc_ref,
               loss_ref, ap_ref, an_ref):
        j = pl.program_id(1)

        @pl.when(j == 0)
        def _init():
            ap_ref[...] = jnp.full(ap_ref.shape, -jnp.inf, dtype=jnp.float32)
            an_ref[...] = jnp.full(an_ref.shape, jnp.inf, dtype=jnp.float32)

        # Canonical (M,K) x (K,N) contraction on the MXU: column features arrive
        # pre-transposed from the wrapper, so no XLU transpose is ever emitted.
        gram = jnp.dot(xr_ref[...], xct_ref[...],
                       preferred_element_type=jnp.float32)        # (TM, TN)

        # Squared pairwise distances (sqrt deferred to the mined vectors).
        # Padded columns carry a huge sq-norm (1e30) -> never win the negative
        # min; their sentinel label never matches a real row -> never enter the
        # positive max. No pad mask needed in the kernel.
        dist2 = sqr_ref[...] + sqc_ref[...] - 2.0 * gram          # (TM, TN)

        same = lr_ref[...] == lc_ref[...]                         # (TM, TN)
        ap_tile = jnp.max(jnp.where(same, dist2, jnp.float32(-jnp.inf)),
                          axis=1, keepdims=True)                  # (TM, 1)
        an_tile = jnp.min(jnp.where(same, jnp.float32(jnp.inf), dist2),
                          axis=1, keepdims=True)                  # (TM, 1)
        ap_ref[...] = jnp.maximum(ap_ref[...], ap_tile)
        an_ref[...] = jnp.minimum(an_ref[...], an_tile)

        @pl.when(j == pl.num_programs(1) - 1)
        def _finalize():
            # sqrt is monotone, so mining on dist2 then sqrt-ing the mined
            # values (with the same 1e-12 clamp) matches clamp().sqrt() mining.
            d_ap = jnp.sqrt(jnp.maximum(ap_ref[...], jnp.float32(1e-12)))
            d_an = jnp.sqrt(jnp.maximum(an_ref[...], jnp.float32(1e-12)))
            loss_ref[...] = jnp.maximum(d_ap - d_an + jnp.float32(margin),
                                        jnp.float32(0.0))

    return kernel


def triplet_loss_pallas(inputs, targets, margin=0.3,
                        block_m=None, block_n=None, bf16_threshold=512):
    """inputs: (n, feat_dim) float; targets: (n,) int -> scalar triplet loss."""
    n, d = inputs.shape

    # --- layout / dtype decisions (wrapper side, free) ------------------------
    d_pad = _round_up(max(d, 128), 128)            # MXU/lane-friendly K
    # On v5e it can pay to lower bf16_threshold to ~256 (slow f32 MXU).
    cast_bf16 = d_pad >= bf16_threshold
    feat_dtype = jnp.bfloat16 if cast_bf16 else jnp.float32
    feat_bytes = 2 if cast_bf16 else 4
    sub = 16 if cast_bf16 else 8                   # sublane alignment

    vmem_cap = _vmem_capacity_bytes()
    vmem_limit = max(32 * 1024 * 1024, min((3 * vmem_cap) // 4, 96 * 1024 * 1024))
    budget = int(vmem_limit * 0.9)

    # Bigger default tiles only with bf16 storage (f32 512-tiles would blow the
    # v7x 64-MiB budget at large feature dims).
    if block_m is None:
        block_m = 512 if cast_bf16 else 256
    if block_n is None:
        block_n = 512 if cast_bf16 else 256

    n_al = _round_up(n, sub)

    # --- tile selection --------------------------------------------------------
    tm = _round_up(min(block_m, n_al), sub)
    if n_al <= block_n:
        tn = _round_up(n_al, sub)                  # single column tile (== full dim)
    else:
        tn = _round_up(block_n, 128)               # >1 column tile -> 128-aligned lanes

    # Multi-TensorCore occupancy (v7x): ensure the "parallel" row axis has >=2 tiles.
    if tm >= n_al and n_al >= 2 * sub:
        tm = _round_up(-(-n_al // 2), sub)

    # Shrink tiles until the double-buffered working set fits the VMEM budget.
    while _vmem_footprint(tm, tn, d_pad, feat_bytes) > budget:
        if tm >= tn and tm > sub:
            tm = max(sub, (tm // 2 // sub) * sub)
        elif tn > 128:
            tn = max(128, (tn // 2 // 128) * 128)
        elif tm > sub:
            tm = max(sub, (tm // 2 // sub) * sub)
        else:
            break

    n_rows_pad = _round_up(n_al, tm)
    n_cols_pad = _round_up(n_al, tn)
    if tn != n_cols_pad and tn % 128 != 0:         # re-assert lane legality
        tn = _round_up(tn, 128)
        n_cols_pad = _round_up(n_al, tn)

    # --- data prep (wrapper side) ----------------------------------------------
    xf = jnp.asarray(inputs, jnp.float32)
    lbl = jnp.asarray(targets, jnp.int32)
    sq = jnp.sum(xf * xf, axis=1)                  # squared norms in f32, once
    sentinel = jnp.iinfo(jnp.int32).min            # never equals a real label

    feat = xf.astype(feat_dtype)                   # bf16 in HBM when cast_bf16

    # Row-side arrays (padded to n_rows_pad).
    x_rows = jnp.zeros((n_rows_pad, d_pad), feat_dtype).at[:n, :d].set(feat)
    sqr = jnp.zeros((n_rows_pad, 1), jnp.float32).at[:n, 0].set(sq)
    lr = jnp.full((n_rows_pad, 1), sentinel, jnp.int32).at[:n, 0].set(lbl)

    # Column-side arrays (features pre-transposed, padded to n_cols_pad).
    x_cols_t = jnp.zeros((d_pad, n_cols_pad), feat_dtype).at[:d, :n].set(feat.T)
    sqc = jnp.full((1, n_cols_pad), 1e30, jnp.float32).at[0, :n].set(sq)
    lc = jnp.full((1, n_cols_pad), sentinel, jnp.int32).at[0, :n].set(lbl)

    grid = (n_rows_pad // tm, n_cols_pad // tn)
    n_row_tiles = grid[0]

    # Bytes: row-side streams read once; column-side streams re-read per row tile.
    bytes_rows = n_rows_pad * d_pad * feat_bytes + n_rows_pad * (4 + 4 + 4)
    bytes_cols = n_row_tiles * (n_cols_pad * d_pad * feat_bytes + n_cols_pad * (4 + 4))
    cost = pl.CostEstimate(
        flops=2 * n_rows_pad * n_cols_pad * d_pad + 8 * n_rows_pad * n_cols_pad,
        transcendentals=2 * n_rows_pad,
        bytes_accessed=bytes_rows + bytes_cols)

    # Note: if profiling shows exposed DMA at small d_pad, the column-features
    # BlockSpec is the one to deepen (pipeline_mode=pl.Buffered(3)).
    per_row = pl.pallas_call(
        _triplet_kernel(margin),
        out_shape=jax.ShapeDtypeStruct((n_rows_pad, 1), jnp.float32),
        grid_spec=pltpu.PrefetchScalarGridSpec(
            num_scalar_prefetch=0,
            grid=grid,
            in_specs=[
                pl.BlockSpec((tm, d_pad), lambda i, j: (i, 0)),   # row features
                pl.BlockSpec((d_pad, tn), lambda i, j: (0, j)),   # col features (pre-T)
                pl.BlockSpec((tm, 1), lambda i, j: (i, 0)),       # row sq-norms
                pl.BlockSpec((1, tn), lambda i, j: (0, j)),       # col sq-norms
                pl.BlockSpec((tm, 1), lambda i, j: (i, 0)),       # row labels
                pl.BlockSpec((1, tn), lambda i, j: (0, j)),       # col labels
            ],
            out_specs=pl.BlockSpec((tm, 1), lambda i, j: (i, 0)),
            scratch_shapes=[pltpu.VMEM((tm, 1), jnp.float32),     # running max ap^2
                            pltpu.VMEM((tm, 1), jnp.float32)]),   # running min an^2
        compiler_params=pltpu.CompilerParams(
            dimension_semantics=("parallel", "arbitrary"),
            vmem_limit_bytes=int(vmem_limit)),
        cost_estimate=cost,
    )(x_rows, x_cols_t, sqr, sqc, lr, lc)

    # Final mean over the real rows (padded rows discarded) in plain JAX.
    return jnp.mean(per_row[:n, 0])


def _triplet_loss_ref(inputs, targets, margin=0.3):
    # Pure-JAX reference mirroring the PyTorch semantics
    # (clamp(1e-12).sqrt(), hard-positive max / hard-negative min, mean).
    x = inputs.astype(jnp.float32)
    sq = jnp.sum(x * x, axis=1, keepdims=True)
    dist = jnp.sqrt(jnp.maximum(sq + sq.T - 2.0 * (x @ x.T), 1e-12))
    mask = targets[:, None] == targets[None, :]
    dist_ap = jnp.max(jnp.where(mask, dist, -jnp.inf), axis=1)
    dist_an = jnp.min(jnp.where(mask, jnp.inf, dist), axis=1)
    return jnp.mean(jnp.maximum(dist_ap - dist_an + margin, 0.0))


if __name__ == "__main__":
    key = jax.random.PRNGKey(0)

    # 1) Small case matching the module forward: (batch, feat_dim) features.
    n, feat_dim = 8, 32
    x = jax.random.normal(key, (n, feat_dim), dtype=jnp.float32)
    targets = jnp.array([0, 0, 1, 1, 2, 2, 3, 3], dtype=jnp.int32)
    loss = jax.block_until_ready(triplet_loss_pallas(x, targets, margin=0.3))
    ref = _triplet_loss_ref(x, targets, margin=0.3)
    assert jnp.allclose(loss, ref, atol=1e-5, rtol=1e-4), (loss, ref)

    # 2) Multi-tile f32 case exercising the (parallel row, arbitrary col) grid,
    #    the running VMEM accumulators and feature-dim padding.
    k1, k2 = jax.random.split(key)
    n2, d2 = 256, 64
    x2 = jax.random.normal(k1, (n2, d2), dtype=jnp.float32)
    t2 = jnp.arange(n2, dtype=jnp.int32) % 8
    loss2 = jax.block_until_ready(
        triplet_loss_pallas(x2, t2, margin=0.3, block_m=64, block_n=128))
    ref2 = _triplet_loss_ref(x2, t2, margin=0.3)
    assert jnp.allclose(loss2, ref2, atol=1e-4, rtol=1e-4), (loss2, ref2)

    # 3) bf16-storage path (d_pad >= 512): wrapper casts features to bf16,
    #    exercises the 2-row-tile split and bf16 MXU Gram with f32 norms.
    n3, d3 = 64, 512
    x3 = jax.random.normal(k2, (n3, d3), dtype=jnp.float32)
    t3 = jnp.arange(n3, dtype=jnp.int32) % 8
    loss3 = jax.block_until_ready(triplet_loss_pallas(x3, t3, margin=0.3))
    ref3 = _triplet_loss_ref(x3, t3, margin=0.3)
    assert jnp.allclose(loss3, ref3, atol=5e-2, rtol=1e-2), (loss3, ref3)

    print("KERNEL_OK")
</pallas_src>

<mosaic_0001>
module attributes {stable_mosaic.version = 11 : i64} {
  func.func @kernel(%arg0: i32, %arg1: i32, %arg2: memref<8x128xf32, #tpu.memory_space<vmem>>, %arg3: memref<128x8xf32, #tpu.memory_space<vmem>>, %arg4: memref<8x1xf32, #tpu.memory_space<vmem>>, %arg5: memref<1x8xf32, #tpu.memory_space<vmem>>, %arg6: memref<8x1xi32, #tpu.memory_space<vmem>>, %arg7: memref<1x8xi32, #tpu.memory_space<vmem>>, %arg8: memref<8x1xf32, #tpu.memory_space<vmem>>, %arg9: memref<8x1xf32, #tpu.memory_space<vmem>>, %arg10: memref<8x1xf32, #tpu.memory_space<vmem>>) attributes {dimension_semantics = [#tpu.dimension_semantics<parallel>, #tpu.dimension_semantics<arbitrary>], iteration_bounds = array<i64: 1, 1>, scalar_prefetch = 0 : i64, scratch_operands = 2 : i64, tpu.core_type = #tpu.core_type<tc>, window_params = [{transform_indices = @transform_0, window_bounds = array<i64: 8, 128>}, {transform_indices = @transform_1, window_bounds = array<i64: 128, 8>}, {transform_indices = @transform_2, window_bounds = array<i64: 8, 1>}, {transform_indices = @transform_3, window_bounds = array<i64: 1, 8>}, {transform_indices = @transform_4, window_bounds = array<i64: 8, 1>}, {transform_indices = @transform_5, window_bounds = array<i64: 1, 8>}, {transform_indices = @transform_6, window_bounds = array<i64: 8, 1>}]} {
    %c0_i32 = arith.constant 0 : i32
    %0 = arith.cmpi eq, %arg1, %c0_i32 : i32
    %1 = arith.extui %0 : i1 to i32
    %c0_i32_0 = arith.constant 0 : i32
    %2 = arith.cmpi ne, %1, %c0_i32_0 : i32
    scf.if %2 {
      %cst_27 = arith.constant 0xFF800000 : f32
      %36 = vector.broadcast %cst_27 : f32 to vector<8x1xf32>
      %c0_28 = arith.constant 0 : index
      %c0_29 = arith.constant 0 : index
      %37 = vector.load %arg9[%c0_28, %c0_29] : memref<8x1xf32, #tpu.memory_space<vmem>>, vector<8x1xf32>
      tpu.vector_store %arg9[%c0_28, %c0_29], %36 {strides = array<i32>} : memref<8x1xf32, #tpu.memory_space<vmem>>, vector<8x1xf32>,
      %cst_30 = arith.constant 0x7F800000 : f32
      %38 = vector.broadcast %cst_30 : f32 to vector<8x1xf32>
      %c0_31 = arith.constant 0 : index
      %c0_32 = arith.constant 0 : index
      %39 = vector.load %arg10[%c0_31, %c0_32] : memref<8x1xf32, #tpu.memory_space<vmem>>, vector<8x1xf32>
      tpu.vector_store %arg10[%c0_31, %c0_32], %38 {strides = array<i32>} : memref<8x1xf32, #tpu.memory_space<vmem>>, vector<8x1xf32>,
    } else {
    }
    %c0 = arith.constant 0 : index
    %c0_1 = arith.constant 0 : index
    %3 = vector.load %arg2[%c0, %c0_1] : memref<8x128xf32, #tpu.memory_space<vmem>>, vector<8x128xf32>
    %c0_2 = arith.constant 0 : index
    %c0_3 = arith.constant 0 : index
    %4 = vector.load %arg3[%c0_2, %c0_3] : memref<128x8xf32, #tpu.memory_space<vmem>>, vector<128x8xf32>
    %cst = arith.constant dense<0.000000e+00> : vector<8x8xf32>
    %5 = tpu.matmul %3, %4, %cst {dimension_numbers = #tpu.dot_dimension_numbers<[1], [0], [0], [1], [0, 0, 1, 1], [], []>} : vector<8x128xf32>, vector<128x8xf32>, vector<8x8xf32> -> vector<8x8xf32>
    %c0_4 = arith.constant 0 : index
    %c0_5 = arith.constant 0 : index
    %6 = vector.load %arg4[%c0_4, %c0_5] : memref<8x1xf32, #tpu.memory_space<vmem>>, vector<8x1xf32>
    %c0_6 = arith.constant 0 : index
    %c0_7 = arith.constant 0 : index
    %7 = vector.load %arg5[%c0_6, %c0_7] : memref<1x8xf32, #tpu.memory_space<vmem>>, vector<1x8xf32>
    %8 = vector.broadcast %6 : vector<8x1xf32> to vector<8x8xf32>
    %9 = vector.broadcast %7 : vector<1x8xf32> to vector<8x8xf32>
    %10 = arith.addf %8, %9 : vector<8x8xf32>
    %cst_8 = arith.constant 2.000000e+00 : f32
    %11 = vector.broadcast %cst_8 : f32 to vector<8x8xf32>
    %12 = arith.mulf %11, %5 : vector<8x8xf32>
    %13 = arith.subf %10, %12 : vector<8x8xf32>
    %c0_9 = arith.constant 0 : index
    %c0_10 = arith.constant 0 : index
    %14 = vector.load %arg6[%c0_9, %c0_10] : memref<8x1xi32, #tpu.memory_space<vmem>>, vector<8x1xi32>
    %c0_11 = arith.constant 0 : index
    %c0_12 = arith.constant 0 : index
    %15 = vector.load %arg7[%c0_11, %c0_12] : memref<1x8xi32, #tpu.memory_space<vmem>>, vector<1x8xi32>
    %16 = vector.broadcast %14 : vector<8x1xi32> to vector<8x8xi32>
    %17 = vector.broadcast %15 : vector<1x8xi32> to vector<8x8xi32>
    %18 = arith.cmpi eq, %16, %17 : vector<8x8xi32>
    %cst_13 = arith.constant 0xFF800000 : f32
    %19 = vector.broadcast %cst_13 : f32 to vector<8x8xf32>
    %20 = arith.select %18, %13, %19 : vector<8x8xi1>, vector<8x8xf32>
    %cst_14 = arith.constant dense<0xFF800000> : vector<8xf32>
    %21 = vector.multi_reduction <maximumf>, %20, %cst_14 [1] : vector<8x8xf32> to vector<8xf32>
    %22 = vector.shape_cast %21 : vector<8xf32> to vector<8x1xf32>
    %cst_15 = arith.constant 0x7F800000 : f32
    %23 = vector.broadcast %cst_15 : f32 to vector<8x8xf32>
    %24 = arith.select %18, %23, %13 : vector<8x8xi1>, vector<8x8xf32>
    %cst_16 = arith.constant dense<0x7F800000> : vector<8xf32>
    %25 = vector.multi_reduction <minimumf>, %24, %cst_16 [1] : vector<8x8xf32> to vector<8xf32>
    %26 = vector.shape_cast %25 : vector<8xf32> to vector<8x1xf32>
    %c0_17 = arith.constant 0 : index
    %c0_18 = arith.constant 0 : index
    %27 = vector.load %arg9[%c0_17, %c0_18] : memref<8x1xf32, #tpu.memory_space<vmem>>, vector<8x1xf32>
    %28 = arith.maximumf %27, %22 : vector<8x1xf32>
    %c0_19 = arith.constant 0 : index
    %c0_20 = arith.constant 0 : index
    %29 = vector.load %arg9[%c0_19, %c0_20] : memref<8x1xf32, #tpu.memory_space<vmem>>, vector<8x1xf32>
    tpu.vector_store %arg9[%c0_19, %c0_20], %28 {strides = array<i32>} : memref<8x1xf32, #tpu.memory_space<vmem>>, vector<8x1xf32>,
    %c0_21 = arith.constant 0 : index
    %c0_22 = arith.constant 0 : index
    %30 = vector.load %arg10[%c0_21, %c0_22] : memref<8x1xf32, #tpu.memory_space<vmem>>, vector<8x1xf32>
    %31 = arith.minimumf %30, %26 : vector<8x1xf32>
    %c0_23 = arith.constant 0 : index
    %c0_24 = arith.constant 0 : index
    %32 = vector.load %arg10[%c0_23, %c0_24] : memref<8x1xf32, #tpu.memory_space<vmem>>, vector<8x1xf32>
    tpu.vector_store %arg10[%c0_23, %c0_24], %31 {strides = array<i32>} : memref<8x1xf32, #tpu.memory_space<vmem>>, vector<8x1xf32>,
    %c0_i32_25 = arith.constant 0 : i32
    %33 = arith.cmpi eq, %arg1, %c0_i32_25 : i32
    %34 = arith.extui %33 : i1 to i32
    %c0_i32_26 = arith.constant 0 : i32
    %35 = arith.cmpi ne, %34, %c0_i32_26 : i32
    scf.if %35 {
      %c0_27 = arith.constant 0 : index
      %c0_28 = arith.constant 0 : index
      %36 = vector.load %arg9[%c0_27, %c0_28] : memref<8x1xf32, #tpu.memory_space<vmem>>, vector<8x1xf32>
      %cst_29 = arith.constant 9.99999996E-13 : f32
      %37 = vector.broadcast %cst_29 : f32 to vector<8x1xf32>
      %38 = arith.maximumf %36, %37 : vector<8x1xf32>
      %39 = math.sqrt %38 : vector<8x1xf32>
      %c0_30 = arith.constant 0 : index
      %c0_31 = arith.constant 0 : index
      %40 = vector.load %arg10[%c0_30, %c0_31] : memref<8x1xf32, #tpu.memory_space<vmem>>, vector<8x1xf32>
      %cst_32 = arith.constant 9.99999996E-13 : f32
      %41 = vector.broadcast %cst_32 : f32 to vector<8x1xf32>
      %42 = arith.maximumf %40, %41 : vector<8x1xf32>
      %43 = math.sqrt %42 : vector<8x1xf32>
      %44 = arith.subf %39, %43 : vector<8x1xf32>
      %cst_33 = arith.constant 3.000000e-01 : f32
      %45 = vector.broadcast %cst_33 : f32 to vector<8x1xf32>
      %46 = arith.addf %44, %45 : vector<8x1xf32>
      %cst_34 = arith.constant 0.000000e+00 : f32
      %47 = vector.broadcast %cst_34 : f32 to vector<8x1xf32>
      %48 = arith.maximumf %46, %47 : vector<8x1xf32>
      %c0_35 = arith.constant 0 : index
      %c0_36 = arith.constant 0 : index
      %49 = vector.load %arg8[%c0_35, %c0_36] : memref<8x1xf32, #tpu.memory_space<vmem>>, vector<8x1xf32>
      tpu.vector_store %arg8[%c0_35, %c0_36], %48 {strides = array<i32>} : memref<8x1xf32, #tpu.memory_space<vmem>>, vector<8x1xf32>,
    } else {
    }
    return
  }
  func.func @transform_0(%arg0: i32, %arg1: i32) -> (i32, i32) {
    %c0_i32 = arith.constant 0 : i32
    %c0_i32_0 = arith.constant 0 : i32
    return %arg0, %c0_i32 : i32, i32
  }
  func.func @transform_1(%arg0: i32, %arg1: i32) -> (i32, i32) {
    %c0_i32 = arith.constant 0 : i32
    %c0_i32_0 = arith.constant 0 : i32
    return %c0_i32, %arg1 : i32, i32
  }
  func.func @transform_2(%arg0: i32, %arg1: i32) -> (i32, i32) {
    %c0_i32 = arith.constant 0 : i32
    %c0_i32_0 = arith.constant 0 : i32
    return %arg0, %c0_i32 : i32, i32
  }
  func.func @transform_3(%arg0: i32, %arg1: i32) -> (i32, i32) {
    %c0_i32 = arith.constant 0 : i32
    %c0_i32_0 = arith.constant 0 : i32
    return %c0_i32, %arg1 : i32, i32
  }
  func.func @transform_4(%arg0: i32, %arg1: i32) -> (i32, i32) {
    %c0_i32 = arith.constant 0 : i32
    %c0_i32_0 = arith.constant 0 : i32
    return %arg0, %c0_i32 : i32, i32
  }
  func.func @transform_5(%arg0: i32, %arg1: i32) -> (i32, i32) {
    %c0_i32 = arith.constant 0 : i32
    %c0_i32_0 = arith.constant 0 : i32
    return %c0_i32, %arg1 : i32, i32
  }
  func.func @transform_6(%arg0: i32, %arg1: i32) -> (i32, i32) {
    %c0_i32 = arith.constant 0 : i32
    %c0_i32_0 = arith.constant 0 : i32
    return %arg0, %c0_i32 : i32, i32
  }
}

</mosaic_0001>

<bundles_post_ra>
// kernel: tpu_custom_call.1
= control target key start
LH: loop header
LB: loop body
LE: loop exit
PB: predicated region body
PF: predicated region fallthrough
CT: control target
= control target key end

     0   :  { %v252_v0 = vmov 0.0   ;;  %vm253_vm0 = vmmov 0   ;;  %v254_v3 = vmov 0   ;;  %vm27_vm1 = vcmask 7168   ;;  %s363_s1 = inlined_call_operand.vmem [shape: f32[128,8], index: 1, kind: input, shape index: {}]   ;;  %s364_s2 = inlined_call_operand.vmem [shape: f32[8,1], index: 2, kind: input, shape index: {}]   ;;  %s365_s4 = inlined_call_operand.vmem [shape: s32[8,1], index: 4, kind: input, shape index: {}]   ;;  %s366_s0 = inlined_call_operand.vmem [shape: f32[8,128], index: 0, kind: input, shape index: {}]   ;;  %s367_s3 = inlined_call_operand.vmem [shape: f32[1,8], index: 3, kind: input, shape index: {}]   ;;  %s368_s5 = inlined_call_operand.vmem [shape: s32[1,8], index: 5, kind: input, shape index: {}]   ;;  %s369_s6 = inlined_call_operand.vmem [shape: f32[8,1], index: 6, kind: output, shape index: {}]  }
   0x1   :  { %207 = vmatprep.subr.mxu0 %v252_v0  ;;  %v46_v1 = vld [vmem:[%s363_s1 + $0x78] sm:$0xff]  ;;  %v45_v2 = vld [vmem:[%s363_s1 + $0x70] sm:$0xff]  ;;  %239 = vmatprep.mubr.msk.f32.mxu0 %vm253_vm0, %v252_v0  ;;  %v44_v4 = vld [vmem:[%s363_s1 + $0x68] sm:$0xff]  ;;  %v255_v21 = vmov -inf   ;;  %vm144_vm2 = vcmask 64512   ;;  %v256_v35 = vmov inf  }
   0x2   :  { %208 = vmatpush3.msra.mxu0 %v46_v1  ;;  %247 = vset.pattern.permute.xlu0 %v254_v3  ;;  %v43_v5 = vld [vmem:[%s363_s1 + $0x60] sm:$0xff]  ;;  %v42_v7 = vld [vmem:[%s363_s1 + $0x58] sm:$0xff]  ;;  %v41_v9 = vld [vmem:[%s363_s1 + $0x50] sm:$0xff]  ;;  %28 = vst.msk [vmem:[#allocation2] sm:$0xff] %vm27_vm1, %v255_v21 }
   0x3   :  { %209 = vmatprep.subr.mxu0 %v252_v0  ;;  %v117_v6 = vld [vmem:[%s364_s2] sm:$0xff]  ;;  %v40_v10 = vld [vmem:[%s363_s1 + $0x48] sm:$0xff]  ;;  %v38_v12 = vld [vmem:[%s363_s1 + $0x38] sm:$0xff]  ;;  %29 = vst.msk [vmem:[#allocation3] sm:$0xff] %vm27_vm1, %v256_v35 }
   0x4   :  { %210 = vmatpush3.msra.mxu0 %v45_v2  ;;  %121 = vperm.xlu0 %247, %v117_v6   ;;  %v133_v8 = vld [vmem:[%s365_s4] sm:$0xff]  ;;  %v37_v13 = vld [vmem:[%s363_s1 + $0x30] sm:$0xff]  ;;  %v36_v14 = vld [vmem:[%s363_s1 + $0x28] sm:$0xff] }
   0x5   :  { %211 = vmatprep.subr.mxu0 %v252_v0  ;;  %v39_v11 = vld [vmem:[%s363_s1 + $0x40] sm:$0xff]  ;;  %v34_v16 = vld [vmem:[%s363_s1 + $0x18] sm:$0xff]  ;;  %v33_v17 = vld [vmem:[%s363_s1 + $0x10] sm:$0xff] }
   0x6   :  { %212 = vmatpush3.msra.mxu0 %v44_v4  ;;  %v35_v15 = vld [vmem:[%s363_s1 + $0x20] sm:$0xff]  ;;  %v32_v18 = vld [vmem:[%s363_s1 + $0x8] sm:$0xff] }
   0x7   :  { %213 = vmatprep.subr.mxu0 %v252_v0  ;;  %v31_v19 = vld [vmem:[%s363_s1] sm:$0xff] }
   0x8   :  { %214 = vmatpush3.msra.mxu0 %v43_v5  ;;  %136 = vperm.xlu0 %247, %v133_v8   ;;  %v30_v20 = vld [vmem:[%s366_s0] sm:$0xff] }
   0x9   :  { %215 = vmatprep.subr.mxu0 %v252_v0  ;;  %v188_v23 = vld [vmem:[%s367_s3] ss:$0 sm:$0xff] }
   0xa   :  { %216 = vmatpush3.msra.mxu0 %v42_v7  ;;  %v189_v26 = vld [vmem:[%s368_s5] ss:$0 sm:$0xff]  ;;  %v156_v39 = vld [vmem:[#allocation3] sm:$0xff] }
   0xb   :  { %217 = vmatprep.subr.mxu0 %v252_v0  ;;  %v152_v36 = vld [vmem:[#allocation2] sm:$0xff] }
   0xc   :  { %218 = vmatpush3.msra.mxu0 %v41_v9 }
   0xd   :  { %219 = vmatprep.subr.mxu0 %v252_v0 }
   0xe   :  { %220 = vmatpush3.msra.mxu0 %v40_v10 }
   0xf   :  { %221 = vmatprep.subr.mxu0 %v252_v0 }
  0x10   :  { %222 = vmatpush3.msra.mxu0 %v39_v11 }
  0x11   :  { %223 = vmatprep.subr.mxu0 %v252_v0 }
  0x12   :  { %224 = vmatpush3.msra.mxu0 %v38_v12 }
  0x13   :  { %225 = vmatprep.subr.mxu0 %v252_v0 }
  0x14   :  { %226 = vmatpush3.msra.mxu0 %v37_v13 }
  0x15   :  { %227 = vmatprep.subr.mxu0 %v252_v0 }
  0x16   :  { %228 = vmatpush3.msra.mxu0 %v36_v14 }
  0x17   :  { %229 = vmatprep.subr.mxu0 %v252_v0 }
  0x18   :  { %230 = vmatpush3.msra.mxu0 %v35_v15 }
  0x19   :  { %231 = vmatprep.subr.mxu0 %v252_v0 }
  0x1a   :  { %232 = vmatpush3.msra.mxu0 %v34_v16 }
  0x1b   :  { %233 = vmatprep.subr.mxu0 %v252_v0 }
  0x1c   :  { %234 = vmatpush3.msra.mxu0 %v33_v17 }
  0x1d   :  { %235 = vmatprep.subr.mxu0 %v252_v0 }
  0x1e   :  { %236 = vmatpush3.msra.mxu0 %v32_v18 }
  0x1f   :  { %237 = vmatprep.subr.mxu0 %v252_v0 }
  0x20   :  { %238 = vmatpush3.msra.mxu0 %v31_v19 }
  0x21   :  { %240 = vmatmul.mubr.f32.vlgmr.msra.gmra.mxu0 %v30_v20 }
  0x7f   :  { %v122_v22 = vpop.permute.xlu0 %121 }
  0x80   :  { %v130_v24 = vadd.f32 %v188_v23, %v122_v22 }
  0x83   :  { %v137_v27 = vpop.permute.xlu0 %136 }
  0x84   :  { %vm142_vm3 = vcmp.eq.s32.totalorder %v137_v27, %v189_v26 }
  0xe1   :  { %v113_v25 = vpop.f32.mrf.mxu0 }
  0xe2   :  { %v131_v28 = vmul.f32 2.0, %v113_v25 }
  0xe3   :  { %v241_v29 = vpop.f32.mrf.mxu0 }
  0xe4   :  { %v132_v30 = vsub.f32 %v130_v24, %v131_v28 }
  0xe6   :  { %v143_v31 = vsel %vm142_vm3, %v132_v30, -inf  ;;  %v148_v33 = vsel %vm142_vm3, inf, %v132_v30 }
  0xe7   :  { %v145_v32 = vsel %vm144_vm2, %v143_v31, -inf  ;;  %v149_v34 = vsel %vm144_vm2, %v148_v33, inf }
  0xe8   :  { %146 = vmax.xlane.f32.xlu1 %v145_v32 }
  0xec   :  { %150 = vmin.xlane.f32.xlu1 %v149_v34 }
 0x171   :  { %v147_v37 = vpop.xlane.xlu1 %146 }
 0x172   :  { %v153_v38 = vmax.f32 %v152_v36, %v147_v37 }
 0x174   :  { %155 = vst.msk [vmem:[#allocation2] sm:$0xff] %vm27_vm1, %v153_v38 }
 0x175   :  { %v151_v40 = vpop.xlane.xlu1 %150 }
 0x176   :  { %v157_v41 = vmin.f32 %v156_v39, %v151_v40 }
 0x178   :  { %158 = vst.msk [vmem:[#allocation3] sm:$0xff] %vm27_vm1, %v157_v41 }
 0x17b   :  { %v162_v42 = vld [vmem:[#allocation2] sm:$0xff] }
 0x17c   :  { %v163_v43 = vmax.f32 %v162_v42, 1e-12 }
 0x17e   :  { %248 = vrsqrt.f32 %v163_v43  ;;  %vm166_vm4 = vcmp.eq.f32.partialorder %v163_v43, inf  ;;  %v169_v51 = vand.u32 2147483648, %v163_v43  ;;  %vm168_vm6 = vcmp.eq.f32.partialorder %v163_v43, 0.0 }
 0x17f   :  { %v171_v44 = vld [vmem:[#allocation3] sm:$0xff] }
 0x180   :  { %v172_v45 = vmax.f32 %v171_v44, 1e-12 }
 0x182   :  { %250 = vrsqrt.f32 %v172_v45  ;;  %vm175_vm5 = vcmp.eq.f32.partialorder %v172_v45, inf  ;;  %v178_v52 = vand.u32 2147483648, %v172_v45  ;;  %vm177_vm7 = vcmp.eq.f32.partialorder %v172_v45, 0.0 }
 0x18b   :  { %v249_v46 = vpop.eup %248 }
 0x18c   :  { %v165_v47 = vmul.f32 %v249_v46, %v163_v43 }
 0x18e   :  { %v167_v49 = vsel %vm166_vm4, %v163_v43, %v165_v47 }
 0x18f   :  { %v251_v48 = vpop.eup %250  ;;  %v170_v54 = vsel %vm168_vm6, %v169_v51, %v167_v49 }
 0x190   :  { %v174_v50 = vmul.f32 %v251_v48, %v172_v45 }
 0x192   :  { %v176_v53 = vsel %vm175_vm5, %v172_v45, %v174_v50 }
 0x193   :  { %v179_v55 = vsel %vm177_vm7, %v178_v52, %v176_v53 }
 0x194   :  { %v180_v56 = vsub.f32 %v170_v54, %v179_v55 }
 0x196   :  { %v181_v57 = vadd.f32 0.3, %v180_v56 }
 0x198   :  { %v182_v58 = vmax.f32 %v181_v57, 0.0 }
 0x19a   :  { %183 = vst.msk [vmem:[%s369_s6] sm:$0xff] %vm27_vm1, %v182_v58 }

</bundles_post_ra>
